<compile_context>
chip_gen: v6e
topology: v6e:2x2x1
jax: 0.10.0
libtpu: 0.0.40
codegen_flags: <defaults>
</compile_context>

<pallas_src>
import jax
import jax.numpy as jnp
from jax.experimental import pallas as pl
from jax.experimental.pallas import tpu as pltpu


def _round_up(v, m):
    return ((v + m - 1) // m) * m


def zero_init_ffn_kernel(x_ref, w_ref, b_ref, o_ref):
    # x_ref: (TM, D_in)   activation row tile (streamed / double-buffered)
    # w_ref: (D_in, TN)   weight tile in (K, N) layout -> MXU consumes it directly
    # b_ref: (1, TN)      bias tile
    # o_ref: (TM, TN)     output tile
    acc = jnp.dot(x_ref[...], w_ref[...], preferred_element_type=jnp.float32)
    o_ref[...] = (acc + b_ref[...].astype(jnp.float32)).astype(o_ref.dtype)


def _vmem_limit_bytes():
    cap = 128 * 1024 * 1024  # v5e / v6e physical VMEM per TensorCore
    try:
        cap = int(getattr(pltpu.get_tpu_info(), "vmem_capacity_bytes", cap))
    except Exception:
        pass
    # ~48 MiB on v7x (64 MiB/TC), ~96 MiB on v5e/v6e (128 MiB/TC).
    return int(cap * 0.75)


def _select_tiles(m, d_in, d_out, x_bytes, w_bytes, b_bytes, o_bytes, budget,
                  tm_init, tn_init):
    """Pick (TM, TN). Shrink TN first (keeps MXU-shaped tiles); TM only last."""
    tm = min(tm_init, _round_up(max(m, 1), 8))
    if tm > 128:
        tm = _round_up(tm, 128)          # MXU / lane friendly on all generations
    tn = tn_init if tn_init is not None else d_out

    def fits(tm_, tn_):
        est = (2 * tm_ * d_in * x_bytes      # x, double-buffered
               + 2 * d_in * tn_ * w_bytes    # weight (worst case: double-buffered)
               + 2 * tn_ * b_bytes           # bias
               + 2 * tm_ * tn_ * o_bytes)    # out, double-buffered
        return est <= budget

    while tn > 128 and not fits(tm, tn):
        tn = _round_up(tn // 2, 128)
    while tm > 128 and not fits(tm, tn):
        tm = _round_up(tm // 2, 128)
    # TODO(synk): if (128,128) tiles still do not fit (huge d_in), tile K with an
    # f32 VMEM accumulator instead of proceeding.
    return tm, tn


def _invariant_spec(block_shape, index_map, single_buffer):
    """BlockSpec for a grid-invariant operand; single-buffer it when the tile is
    big enough for the saved VMEM to matter (no re-fetch happens anyway)."""
    if single_buffer:
        try:
            return pl.BlockSpec(block_shape, index_map,
                                pipeline_mode=pl.Buffered(1))
        except (TypeError, AttributeError):
            pass  # older jax without pipeline_mode / Buffered
    return pl.BlockSpec(block_shape, index_map)


def zero_init_ffn(x, weight, bias, *, tm=512, tn=None, force_pallas=None):
    """Forward pass of ZeroInitFFN (== nn.Linear(latent_dim, latent_dim)).

    x:      (..., D_in) feature-last activations (f32 or bf16; f32 accumulation)
    weight: (D_out, D_in) PyTorch-convention Linear weight
    bias:   (D_out,)      Linear bias
    """
    d_out, d_in = weight.shape
    orig_shape = x.shape
    x2 = x.reshape(-1, d_in)                 # (M, D_in)
    m = x2.shape[0]

    w_t = weight.T                           # one-time (K, N) relayout, amortized
    b2 = bias.reshape(1, d_out)

    # Small-problem escape hatch: let XLA fuse the matmul into neighboring ops.
    tiny = (m == 0) or (m * d_in * d_out) < (1 << 18)
    use_pallas = (not tiny) if force_pallas is None else force_pallas
    if (not use_pallas) or m == 0:
        out = (jnp.dot(x2, w_t, preferred_element_type=jnp.float32)
               + b2.astype(jnp.float32)).astype(x.dtype)
        return out.reshape(orig_shape[:-1] + (d_out,))

    vmem_limit = _vmem_limit_bytes()
    x_bytes = jnp.dtype(x.dtype).itemsize
    w_bytes = jnp.dtype(weight.dtype).itemsize
    b_bytes = jnp.dtype(bias.dtype).itemsize
    o_bytes = x_bytes                        # out_shape uses x.dtype below
    tm_eff, tn_eff = _select_tiles(m, d_in, d_out, x_bytes, w_bytes, b_bytes,
                                   o_bytes, int(vmem_limit * 0.85), tm, tn)

    # cdiv grid: no padding of x, no slicing of out (ragged last blocks are handled
    # by Pallas — OOB reads padded, OOB writes dropped, no cross-row reduction).
    grid = (pl.cdiv(m, tm_eff), pl.cdiv(d_out, tn_eff))
    n_resident = grid[1] == 1
    single_buffer_inv = n_resident and (d_in * tn_eff * w_bytes >= (512 << 10))

    out = pl.pallas_call(
        zero_init_ffn_kernel,
        out_shape=jax.ShapeDtypeStruct((m, d_out), x.dtype),
        grid_spec=pltpu.PrefetchScalarGridSpec(
            num_scalar_prefetch=0,
            grid=grid,
            in_specs=[
                # x row tile, streamed/double-buffered. If xprof on v7x shows
                # exposed input DMA, deepen with pipeline_mode=pl.Buffered(3).
                pl.BlockSpec((tm_eff, d_in), lambda i, j: (i, 0)),
                # weight (K, N) tile: VMEM-resident when grid[1]==1, N-tiled otherwise.
                _invariant_spec((d_in, tn_eff), lambda i, j: (0, j),
                                single_buffer_inv),
                # bias tile
                _invariant_spec((1, tn_eff), lambda i, j: (0, j),
                                single_buffer_inv),
            ],
            out_specs=pl.BlockSpec((tm_eff, tn_eff), lambda i, j: (i, j)),
        ),
        compiler_params=pltpu.CompilerParams(
            dimension_semantics=("parallel", "parallel"),  # both axes independent
            vmem_limit_bytes=vmem_limit,
        ),
    )(x2, w_t, b2)

    return out.reshape(orig_shape[:-1] + (d_out,))


if __name__ == "__main__":
    # Module config: latent_dim = 32; input (batch=2, seq=8, latent_dim=32)
    latent_dim = 32
    key = jax.random.PRNGKey(0)
    kx, kw, kb, kx2, kw2, kb2 = jax.random.split(key, 6)
    x = jax.random.normal(kx, (2, 8, latent_dim), dtype=jnp.float32)

    # Deterministic parameter init exactly as ZeroInitFFN.__init__: zeros.
    weight = jnp.zeros((latent_dim, latent_dim), dtype=jnp.float32)
    bias = jnp.zeros((latent_dim,), dtype=jnp.float32)

    # 1) Shipped config through the Pallas kernel (forced — the auto path would
    #    take the tiny-problem fused-XLA fallback, which is the recommended route).
    out = jax.block_until_ready(zero_init_ffn(x, weight, bias, force_pallas=True))
    ref = x @ weight.T + bias
    assert out.shape == x.shape
    assert jnp.allclose(out, ref, atol=1e-6), "mismatch vs reference (zero params)"

    # 2) Same forward with non-trivial params (semantics identical to nn.Linear).
    w_rand = jax.random.normal(kw, (latent_dim, latent_dim), dtype=jnp.float32)
    b_rand = jax.random.normal(kb, (latent_dim,), dtype=jnp.float32)
    out2 = jax.block_until_ready(zero_init_ffn(x, w_rand, b_rand, force_pallas=True))
    ref2 = x @ w_rand.T + b_rand
    assert jnp.allclose(out2, ref2, atol=1e-5, rtol=1e-5), "mismatch (random params)"

    # 2b) Auto path (tiny-problem XLA fallback) agrees as well.
    out2_auto = jax.block_until_ready(zero_init_ffn(x, w_rand, b_rand))
    assert jnp.allclose(out2_auto, ref2, atol=1e-5, rtol=1e-5), "mismatch (fallback)"

    # 3) Exercise the N-tiled 2-D grid path at a larger latent dim (tn forced small).
    d = 256
    x3 = jax.random.normal(kx2, (2, 8, d), dtype=jnp.float32)
    w3 = jax.random.normal(kw2, (d, d), dtype=jnp.float32) / jnp.sqrt(d)
    b3 = jax.random.normal(kb2, (d,), dtype=jnp.float32)
    out3 = jax.block_until_ready(
        zero_init_ffn(x3, w3, b3, force_pallas=True, tn=128))
    ref3 = x3 @ w3.T + b3
    # Loose tolerance: TPU default-precision matmuls may use bf16 passes with a
    # different accumulation order than the XLA reference.
    assert jnp.allclose(out3, ref3, atol=2e-2, rtol=2e-2), "mismatch (N-tiled path)"

    print("KERNEL_OK")
</pallas_src>

<mosaic_0001>
module attributes {stable_mosaic.version = 11 : i64} {
  func.func @zero_init_ffn_kernel(%arg0: i32, %arg1: i32, %arg2: memref<16x32xf32, #tpu.memory_space<vmem>>, %arg3: memref<32x32xf32, #tpu.memory_space<vmem>>, %arg4: memref<1x32xf32, #tpu.memory_space<vmem>>, %arg5: memref<16x32xf32, #tpu.memory_space<vmem>>) attributes {dimension_semantics = [#tpu.dimension_semantics<parallel>, #tpu.dimension_semantics<parallel>], iteration_bounds = array<i64: 1, 1>, scalar_prefetch = 0 : i64, scratch_operands = 0 : i64, tpu.core_type = #tpu.core_type<tc>, window_params = [{transform_indices = @transform_0, window_bounds = array<i64: 16, 32>}, {transform_indices = @transform_1, window_bounds = array<i64: 32, 32>}, {transform_indices = @transform_2, window_bounds = array<i64: 1, 32>}, {transform_indices = @transform_3, window_bounds = array<i64: 16, 32>}]} {
    %c0 = arith.constant 0 : index
    %c0_0 = arith.constant 0 : index
    %0 = vector.load %arg2[%c0, %c0_0] : memref<16x32xf32, #tpu.memory_space<vmem>>, vector<16x32xf32>
    %c0_1 = arith.constant 0 : index
    %c0_2 = arith.constant 0 : index
    %1 = vector.load %arg3[%c0_1, %c0_2] : memref<32x32xf32, #tpu.memory_space<vmem>>, vector<32x32xf32>
    %cst = arith.constant dense<0.000000e+00> : vector<16x32xf32>
    %2 = tpu.matmul %0, %1, %cst {dimension_numbers = #tpu.dot_dimension_numbers<[1], [0], [0], [1], [0, 0, 1, 1], [], []>} : vector<16x32xf32>, vector<32x32xf32>, vector<16x32xf32> -> vector<16x32xf32>
    %c0_3 = arith.constant 0 : index
    %c0_4 = arith.constant 0 : index
    %3 = vector.load %arg4[%c0_3, %c0_4] : memref<1x32xf32, #tpu.memory_space<vmem>>, vector<1x32xf32>
    %4 = vector.broadcast %3 : vector<1x32xf32> to vector<16x32xf32>
    %5 = arith.addf %2, %4 : vector<16x32xf32>
    %c0_5 = arith.constant 0 : index
    %c0_6 = arith.constant 0 : index
    %6 = vector.load %arg5[%c0_5, %c0_6] : memref<16x32xf32, #tpu.memory_space<vmem>>, vector<16x32xf32>
    tpu.vector_store %arg5[%c0_5, %c0_6], %5 {strides = array<i32>} : memref<16x32xf32, #tpu.memory_space<vmem>>, vector<16x32xf32>,
    return
  }
  func.func @transform_0(%arg0: i32, %arg1: i32) -> (i32, i32) {
    %c0_i32 = arith.constant 0 : i32
    %c0_i32_0 = arith.constant 0 : i32
    return %arg0, %c0_i32 : i32, i32
  }
  func.func @transform_1(%arg0: i32, %arg1: i32) -> (i32, i32) {
    %c0_i32 = arith.constant 0 : i32
    %c0_i32_0 = arith.constant 0 : i32
    return %c0_i32, %arg1 : i32, i32
  }
  func.func @transform_2(%arg0: i32, %arg1: i32) -> (i32, i32) {
    %c0_i32 = arith.constant 0 : i32
    %c0_i32_0 = arith.constant 0 : i32
    return %c0_i32, %arg1 : i32, i32
  }
  func.func @transform_3(%arg0: i32, %arg1: i32) -> (i32, i32) {
    %c0_i32 = arith.constant 0 : i32
    return %arg0, %arg1 : i32, i32
  }
}

</mosaic_0001>

<bundles_post_ra>
// kernel: tpu_custom_call.1
= control target key start
LH: loop header
LB: loop body
LE: loop exit
PB: predicated region body
PF: predicated region fallthrough
CT: control target
= control target key end

     0   :  { %8 = vsyncpa [#allocation3], 0  ;;  %s299_s0 = inlined_call_operand.hbm [shape: f32[16,32], index: 0, kind: input, shape index: {}]   ;;  %s300_s1 = inlined_call_operand.hbm [shape: f32[32,32], index: 1, kind: input, shape index: {}]   ;;  %s301_s2 = inlined_call_operand.vmem [shape: f32[1,32], index: 2, kind: input, shape index: {}]   ;;  %s302_s3 = inlined_call_operand.hbm [shape: f32[16,32], index: 3, kind: output, shape index: {}]  }
   0x1   :  { %9 = vsyncpa [#allocation6], 0 }
   0x2   :  { %10 = vsyncpa [#allocation4], 0  ;;  %s249_s12 = smov [#allocation2]  }
   0x3   :  { %s16_s13 = sshll.u32 %s249_s12, 4  ;;  %s17_s13 = int_to_ptr.vmem [resolvable:$true] %s16_s13 }
   0x4   :  { %s191_s14 = scalar_lea.vmem %s17_s13, 256  ;;  %p196_p1 = scmp.lt.s32.totalorder %s17_s13, %s17_s13 }
   0x5   :  { %p192_p0 = scmp.ne.s32.totalorder %s17_s13, %s191_s14  ;;  %p197_p2 = scmp.lt.s32.totalorder %s191_s14, %s191_s14 }
   0x7   :  { %p198_p3 = por %p197_p2, %p196_p1 }
   0x9   :  { %p199_p4 = pnand %p198_p3, %p192_p0 }
   0xb   :  { %202 = shalt.err (!%p199_p4)
}
   0xc   :  { %s250_s15 = smov 128   ;;  %s251_s16 = smov 8  }
   0xd   :  { %22 = dma.hbm_to_vmem [thread:$0]  %s299_s0, 256, %s17_s13, [#allocation3], %s250_s15, %s250_s15, %s251_s16  }
   0xe   :  { %s252_s19 = smov [#allocation5]  }
   0xf   :  { %s28_s20 = sshll.u32 %s252_s19, 4  ;;  %s29_s20 = int_to_ptr.vmem [resolvable:$true] %s28_s20 }
  0x10   :  { %s211_s21 = scalar_lea.vmem %s29_s20, 512  ;;  %p216_p6 = scmp.lt.s32.totalorder %s29_s20, %s29_s20 }
  0x11   :  { %p212_p5 = scmp.ne.s32.totalorder %s29_s20, %s211_s21  ;;  %p217_p7 = scmp.lt.s32.totalorder %s211_s21, %s211_s21 }
  0x13   :  { %p218_p8 = por %p217_p7, %p216_p6 }
  0x15   :  { %p219_p9 = pnand %p218_p8, %p212_p5 }
  0x17   :  { %222 = shalt.err (!%p219_p9)
}
  0x18   :  { %34 = dma.hbm_to_vmem [thread:$0]  %s300_s1, 512, %s29_s20, [#allocation6], %s250_s15, %s250_s15, %s251_s16  }
  0x19   :  { %243 = dma.done.wait [#allocation3], 256  }
  0x1a   :  { %244 = vsyncadd [#allocation3], 4294967040 }
  0x1b   :  { %245 = dma.done.wait [#allocation6], 512  }
  0x1c   :  { %246 = vsyncadd [#allocation6], 4294966784  ;;  %vm56_vm0 = vcmask 261120   ;;  %v48_v0 = vld [vmem:[#allocation5 + $0x18] sm:$0xff]  ;;  %v47_v1 = vld [vmem:[#allocation5 + $0x10] sm:$0xff]  ;;  %s253_s24 = smov [#allocation7]  }
  0x1d   :  { %167 = vmatprep.subr.mxu0 %v48_v0  ;;  %v43_v2 = vld [vmem:[#allocation2] sm:$0xff]  ;;  %v46_v3 = vld [vmem:[#allocation5 + $0x8] sm:$0xff]  ;;  %v45_v4 = vld [vmem:[#allocation5] sm:$0xff]  ;;  %s145_s25 = sshll.u32 %s253_s24, 4  ;;  %s146_s25 = int_to_ptr.vmem [resolvable:$true] %s145_s25 }
  0x1e   :  { %168 = vmatpush3.msra.mxu0 %v48_v0  ;;  %175 = vmatprep.mubr.msk.f32.mxu0 %vm56_vm0, %v43_v2  ;;  %v44_v5 = vld [vmem:[#allocation2 + $0x8] sm:$0xff]  ;;  %v158_v6 = vld [vmem:[%s301_s2] ss:$0 sm:$0xff]  ;;  %s223_s26 = scalar_lea.vmem %s146_s25, 256  ;;  %p228_p11 = scmp.lt.s32.totalorder %s146_s25, %s146_s25 }
  0x1f   :  { %169 = vmatprep.subr.mxu0 %v47_v1  ;;  %p224_p10 = scmp.ne.s32.totalorder %s146_s25, %s223_s26  ;;  %p229_p12 = scmp.lt.s32.totalorder %s223_s26, %s223_s26 }
  0x20   :  { %170 = vmatpush3.msra.mxu0 %v47_v1 }
  0x21   :  { %171 = vmatprep.subr.mxu0 %v46_v3  ;;  %p230_p13 = por %p229_p12, %p228_p11 }
  0x22   :  { %172 = vmatpush3.msra.mxu0 %v46_v3 }
  0x23   :  { %173 = vmatprep.subr.mxu0 %v45_v4  ;;  %p231_p0 = pnand %p230_p13, %p224_p10 }
  0x24   :  { %174 = vmatpush3.msra.mxu0 %v45_v4 }
  0x25   :  { %176 = vmatmul.mubr.msk.f32.vlgmr.msra.gmra.mxu0 %vm56_vm0, %v44_v5 }
  0xe5   :  { %v177_v7 = vpop.f32.mrf.mxu0 }
  0xe6   :  { %v135_v8 = vadd.f32 %v177_v7, %v158_v6 }
  0xe7   :  { %v129_v9 = vpop.f32.mrf.mxu0 }
  0xe8   :  { %139 = vst.msk [vmem:[#allocation7 + $0x8] sm:$0xff] %vm56_vm0, %v135_v8  ;;  %v130_v10 = vadd.f32 %v158_v6, %v129_v9 }
  0xea   :  { %138 = vst.msk [vmem:[#allocation7] sm:$0xff] %vm56_vm0, %v130_v10 }
  0xeb   :  { %234 = shalt.err (!%p231_p0)
}
  0xec   :  { %151 = dma.vmem_to_hbm [thread:$0]  %s146_s25, 256, %s302_s3, [#allocation4], %s250_s15, %s250_s15, %s251_s16  }
  0xed   :  { %247 = dma.done.wait [#allocation4], 256  }
  0xee   :  { %248 = vsyncadd [#allocation4], 4294967040 }
  0xef   :  { %155 = vsyncpa [#allocation3], 1 }
  0xf0   :  { %156 = vsyncpa [#allocation6], 1 }
  0xf1   :  { %157 = vsyncpa [#allocation4], 1 }

</bundles_post_ra>
